<compile_context>
chip_gen: v5e
topology: v5e:2x2
jax: 0.10.0
libtpu: 0.0.40
codegen_flags: <defaults>
</compile_context>

<pallas_src>
import functools
import math

import jax
import jax.numpy as jnp
from jax import lax
from jax.experimental import pallas as pl
from jax.experimental.pallas import tpu as pltpu


def _adj_kernel(v1_ref, v2_ref, o_ref, *, neiaccount, tm, tn):
    # v1_ref: (tm, dim_pad)  rows of alpha * tanh(alpha * lin1(emb1(idx)))
    # v2_ref: (tn, dim_pad)  rows of          tanh(alpha * lin2(emb2(idx)))
    i = pl.program_id(0)
    j = pl.program_id(1)
    r0 = i * tm
    c0 = j * tn

    # Minimum |r - c| over this tile; tile touches the band iff gap <= neiaccount.
    gap = jnp.maximum(jnp.maximum(c0 - (r0 + tm - 1), r0 - (c0 + tn - 1)), 0)
    in_band = gap <= neiaccount

    @pl.when(in_band)
    def _():
        # adj = tanh((alpha*v1) @ v2.T); contract last dims (no explicit transpose).
        a = lax.dot_general(v1_ref[...], v2_ref[...], (((1,), (1,)), ((), ())),
                            preferred_element_type=jnp.float32)  # (tm, tn)
        adj = jnp.tanh(a)
        r = r0 + lax.broadcasted_iota(jnp.int32, (tm, tn), 0)
        c = c0 + lax.broadcasted_iota(jnp.int32, (tm, tn), 1)
        o_ref[...] = jnp.where(jnp.abs(r - c) <= neiaccount, adj,
                               0.0).astype(o_ref.dtype)

    @pl.when(jnp.logical_not(in_band))
    def _():
        o_ref[...] = jnp.zeros_like(o_ref)


def _pick_tile(n128, max_tile=512):
    """Largest tile in {max_tile, 256, 128} keeping >= 2 grid steps per axis."""
    for t in (max_tile, 256, 128):
        if t <= n128 and pl.cdiv(n128, t) >= 2:
            return t
    return min(128, n128)


def temporal_graph_constructor_fwd(idx, emb1_w, emb2_w, w1, b1, w2, b2,
                                   *, alpha=3.0, neiaccount=2, max_tile=512):
    """Pallas forward. Returns the masked adjacency [n, n], n = len(idx)."""
    n = idx.shape[0]
    dim = emb1_w.shape[1]
    alpha = float(alpha)

    # --- Prologue (plain XLA): embedding gather + linear + tanh, done ONCE. ---
    e1 = jnp.take(emb1_w, idx, axis=0).astype(jnp.float32)          # (n, dim)
    e2 = jnp.take(emb2_w, idx, axis=0).astype(jnp.float32)          # (n, dim)
    v1 = jnp.tanh(alpha * (e1 @ w1.T.astype(jnp.float32)
                           + b1.astype(jnp.float32)))               # (n, dim)
    v2 = jnp.tanh(alpha * (e2 @ w2.T.astype(jnp.float32)
                           + b2.astype(jnp.float32)))               # (n, dim)
    v1 = alpha * v1   # fold the adjacency alpha into V1 (O(n*dim), one-time)

    # --- Pad: n -> tile multiple, dim -> 128 lanes (zero pad is exact). ---
    n128 = pl.cdiv(n, 128) * 128
    tile = _pick_tile(n128, max_tile)
    n_pad = pl.cdiv(n, tile) * tile
    dim_pad = pl.cdiv(dim, 128) * 128

    v1p = jnp.zeros((n_pad, dim_pad), jnp.float32).at[:n, :dim].set(v1)
    v2p = jnp.zeros((n_pad, dim_pad), jnp.float32).at[:n, :dim].set(v2)

    grid = (n_pad // tile, n_pad // tile)
    kernel = functools.partial(_adj_kernel, neiaccount=int(neiaccount),
                               tm=tile, tn=tile)

    out = pl.pallas_call(
        kernel,
        out_shape=jax.ShapeDtypeStruct((n_pad, n_pad), jnp.float32),
        grid_spec=pltpu.PrefetchScalarGridSpec(
            num_scalar_prefetch=0,
            grid=grid,
            in_specs=[
                pl.BlockSpec((tile, dim_pad), lambda i, j: (i, 0)),  # V1 row tile
                pl.BlockSpec((tile, dim_pad), lambda i, j: (j, 0)),  # V2 col tile
            ],
            out_specs=pl.BlockSpec((tile, tile), lambda i, j: (i, j)),
        ),
        compiler_params=pltpu.CompilerParams(
            dimension_semantics=("parallel", "parallel"),
        ),
    )(v1p, v2p)

    return out[:n, :n]


def _ref_forward(idx, emb1_w, emb2_w, w1, b1, w2, b2, alpha, neiaccount):
    """Plain-JAX reference, mirroring the PyTorch module."""
    e1 = emb1_w[idx]
    e2 = emb2_w[idx]
    v1 = jnp.tanh(alpha * (e1 @ w1.T + b1))
    v2 = jnp.tanh(alpha * (e2 @ w2.T + b2))
    adj = jnp.tanh(alpha * (v1 @ v2.T))
    n = idx.shape[0]
    r = jnp.arange(n)[:, None]
    c = jnp.arange(n)[None, :]
    mask = (jnp.abs(r - c) <= neiaccount).astype(jnp.float32)
    return adj * mask


def init_params(key, nnodes, dim):
    """Deterministic init matching PyTorch defaults in spirit.

    Embedding: N(0, 1).  Linear: uniform(-1/sqrt(fan_in), 1/sqrt(fan_in)).
    """
    k_e1, k_e2, k_w1, k_b1, k_w2, k_b2 = jax.random.split(key, 6)
    emb1_w = jax.random.normal(k_e1, (nnodes, dim), jnp.float32)
    emb2_w = jax.random.normal(k_e2, (nnodes, dim), jnp.float32)
    bound = 1.0 / math.sqrt(dim)
    w1 = jax.random.uniform(k_w1, (dim, dim), jnp.float32, -bound, bound)
    b1 = jax.random.uniform(k_b1, (dim,), jnp.float32, -bound, bound)
    w2 = jax.random.uniform(k_w2, (dim, dim), jnp.float32, -bound, bound)
    b2 = jax.random.uniform(k_b2, (dim,), jnp.float32, -bound, bound)
    return emb1_w, emb2_w, w1, b1, w2, b2


if __name__ == "__main__":
    key = jax.random.PRNGKey(0)
    alpha = 3.0
    neiaccount = 2
    dim = 32

    # (nnodes, max_tile): covers default tile picking, a 3x3 grid that
    # exercises the band-skip branch, and a non-tile-multiple n (padding path).
    configs = [
        (256, 512),   # tile -> 128, 2x2 grid, all tiles in band
        (384, 128),   # 3x3 grid, corner tiles take the zero-fill skip branch
        (200, 512),   # n not a multiple of the tile -> padding + final slice
    ]

    for nnodes, max_tile in configs:
        params = init_params(key, nnodes, dim)
        idx = jnp.arange(nnodes, dtype=jnp.int32)

        adj = temporal_graph_constructor_fwd(
            idx, *params, alpha=alpha, neiaccount=neiaccount, max_tile=max_tile)
        adj = jax.block_until_ready(adj)

        ref = _ref_forward(idx, *params, alpha, neiaccount)

        assert adj.shape == (nnodes, nnodes)
        assert jnp.allclose(adj, ref, atol=1e-4, rtol=1e-4), (
            nnodes, float(jnp.max(jnp.abs(adj - ref))))

    # TODO(synk): static_feat branch (lin on external features) not exercised;
    # the embedding path (static_feat=None, the module default) is implemented.

    print("KERNEL_OK")
</pallas_src>

<mosaic_0001>
module attributes {stable_mosaic.version = 11 : i64} {
  func.func @_adj_kernel(%arg0: i32, %arg1: i32, %arg2: memref<128x128xf32, #tpu.memory_space<vmem>>, %arg3: memref<128x128xf32, #tpu.memory_space<vmem>>, %arg4: memref<128x128xf32, #tpu.memory_space<vmem>>) attributes {dimension_semantics = [#tpu.dimension_semantics<parallel>, #tpu.dimension_semantics<parallel>], iteration_bounds = array<i64: 2, 2>, scalar_prefetch = 0 : i64, scratch_operands = 0 : i64, tpu.core_type = #tpu.core_type<tc>, window_params = [{transform_indices = @transform_0, window_bounds = array<i64: 128, 128>}, {transform_indices = @transform_1, window_bounds = array<i64: 128, 128>}, {transform_indices = @transform_2, window_bounds = array<i64: 128, 128>}]} {
    %c128_i32 = arith.constant 128 : i32
    %0 = arith.muli %arg0, %c128_i32 : i32
    %c128_i32_0 = arith.constant 128 : i32
    %1 = arith.muli %arg1, %c128_i32_0 : i32
    %c128_i32_1 = arith.constant 128 : i32
    %2 = arith.addi %0, %c128_i32_1 : i32
    %c1_i32 = arith.constant 1 : i32
    %3 = arith.subi %2, %c1_i32 : i32
    %4 = arith.subi %1, %3 : i32
    %c128_i32_2 = arith.constant 128 : i32
    %5 = arith.addi %1, %c128_i32_2 : i32
    %c1_i32_3 = arith.constant 1 : i32
    %6 = arith.subi %5, %c1_i32_3 : i32
    %7 = arith.subi %0, %6 : i32
    %8 = arith.maxsi %4, %7 : i32
    %c0_i32 = arith.constant 0 : i32
    %9 = arith.maxsi %8, %c0_i32 : i32
    %c2_i32 = arith.constant 2 : i32
    %10 = arith.cmpi sle, %9, %c2_i32 : i32
    %11 = arith.extui %10 : i1 to i32
    %c0_i32_4 = arith.constant 0 : i32
    %12 = arith.cmpi ne, %11, %c0_i32_4 : i32
    scf.if %12 {
      %c0 = arith.constant 0 : index
      %c0_6 = arith.constant 0 : index
      %16 = vector.load %arg2[%c0, %c0_6] : memref<128x128xf32, #tpu.memory_space<vmem>>, vector<128x128xf32>
      %c0_7 = arith.constant 0 : index
      %c0_8 = arith.constant 0 : index
      %17 = vector.load %arg3[%c0_7, %c0_8] : memref<128x128xf32, #tpu.memory_space<vmem>>, vector<128x128xf32>
      %cst = arith.constant dense<0.000000e+00> : vector<128x128xf32>
      %18 = tpu.matmul %16, %17, %cst {dimension_numbers = #tpu.dot_dimension_numbers<[1], [1], [0], [0], [0, 0, 1, 0], [], []>} : vector<128x128xf32>, vector<128x128xf32>, vector<128x128xf32> -> vector<128x128xf32>
      %19 = math.tanh %18 : vector<128x128xf32>
      %20 = tpu.iota {dimensions = array<i32: 0>} : vector<128x128xi32>
      %21 = vector.broadcast %0 : i32 to vector<128x128xi32>
      %22 = arith.addi %21, %20 : vector<128x128xi32>
      %23 = tpu.iota {dimensions = array<i32: 1>} : vector<128x128xi32>
      %24 = vector.broadcast %1 : i32 to vector<128x128xi32>
      %25 = arith.addi %24, %23 : vector<128x128xi32>
      %26 = arith.subi %22, %25 : vector<128x128xi32>
      %27 = math.absi %26 : vector<128x128xi32>
      %c2_i32_9 = arith.constant 2 : i32
      %28 = vector.broadcast %c2_i32_9 : i32 to vector<128x128xi32>
      %29 = arith.cmpi sle, %27, %28 : vector<128x128xi32>
      %cst_10 = arith.constant 0.000000e+00 : f32
      %30 = vector.broadcast %cst_10 : f32 to vector<128x128xf32>
      %31 = arith.select %29, %19, %30 : vector<128x128xi1>, vector<128x128xf32>
      %c0_11 = arith.constant 0 : index
      %c0_12 = arith.constant 0 : index
      %32 = vector.load %arg4[%c0_11, %c0_12] : memref<128x128xf32, #tpu.memory_space<vmem>>, vector<128x128xf32>
      tpu.vector_store %arg4[%c0_11, %c0_12], %31 {strides = array<i32>} : memref<128x128xf32, #tpu.memory_space<vmem>>, vector<128x128xf32>,
    } else {
    }
    %true = arith.constant true
    %13 = arith.xori %10, %true : i1
    %14 = arith.extui %13 : i1 to i32
    %c0_i32_5 = arith.constant 0 : i32
    %15 = arith.cmpi ne, %14, %c0_i32_5 : i32
    scf.if %15 {
      %cst = arith.constant 0.000000e+00 : f32
      %16 = vector.broadcast %cst : f32 to vector<128x128xf32>
      %c0 = arith.constant 0 : index
      %c0_6 = arith.constant 0 : index
      %17 = vector.load %arg4[%c0, %c0_6] : memref<128x128xf32, #tpu.memory_space<vmem>>, vector<128x128xf32>
      tpu.vector_store %arg4[%c0, %c0_6], %16 {strides = array<i32>} : memref<128x128xf32, #tpu.memory_space<vmem>>, vector<128x128xf32>,
    } else {
    }
    return
  }
  func.func @transform_0(%arg0: i32, %arg1: i32) -> (i32, i32) {
    %c0_i32 = arith.constant 0 : i32
    %c0_i32_0 = arith.constant 0 : i32
    return %arg0, %c0_i32 : i32, i32
  }
  func.func @transform_1(%arg0: i32, %arg1: i32) -> (i32, i32) {
    %c0_i32 = arith.constant 0 : i32
    %c0_i32_0 = arith.constant 0 : i32
    return %arg1, %c0_i32 : i32, i32
  }
  func.func @transform_2(%arg0: i32, %arg1: i32) -> (i32, i32) {
    %c0_i32 = arith.constant 0 : i32
    return %arg0, %arg1 : i32, i32
  }
}

</mosaic_0001>

<bundles_post_ra>
// kernel: tpu_custom_call.1
= control target key start
LH: loop header
LB: loop body
LE: loop exit
PB: predicated region body
PF: predicated region fallthrough
CT: control target
= control target key end

     0   :  { %s1547_s0 = inlined_call_operand.hbm [shape: f32[256,128], index: 0, kind: input, shape index: {}]   ;;  %s1548_s1 = inlined_call_operand.hbm [shape: f32[256,128], index: 1, kind: input, shape index: {}]   ;;  %s1549_s2 = inlined_call_operand.hbm [shape: f32[256,256], index: 2, kind: output, shape index: {}]  }
   0x1   :  { %1558 = sst [smem:[#allocation17_spill]] %s1547_s0 }
   0x2   :  { %1559 = sst [smem:[#allocation18_spill]] %s1549_s2 }
   0x3   :  { %7 = vsyncpa [#allocation3], 0 }
   0x4   :  { %9 = vsyncpa [#allocation3 + $0x1], 0 }
   0x5   :  { %10 = vsyncpa [#allocation6], 0 }
   0x6   :  { %12 = vsyncpa [#allocation6 + $0x1], 0 }
   0x7   :  { %13 = vsyncpa [#allocation4], 0 }
   0x8   :  { %15 = vsyncpa [#allocation4 + $0x1], 0  ;;  %s1131_s9 = smov 0   ;;  %s1133_s10 = smov 0  }
   0x9   :  { %s1135_s11 = smov 0   ;;  %s1137_s12 = smov 0  }
   0xa   :  { %s1139_s13 = smov 0   ;;  %s1141_s14 = smov 0  }
   0xb   :  { %s1143_s15 = smov 0   ;;  %s1145_s16 = smov 0  }
   0xc   :  { %s1147_s17 = smov 0   ;;  %s1149_s18 = smov 0  }
   0xd   :  { %s1151_s19 = smov 0   ;;  %s1153_s20 = smov 0  }
   0xe   :  { %s1155_s21 = smov 0   ;;  %s1157_s22 = smov 0  }
   0xf LB: > { %1560 = sst [smem:[#allocation11_spill]] %s1092_s18  ;;  %s647_s23 = sadd.s32 4294967295, %s1108_s22   ;;  %s1108_s22 = sphi %s1157_s22, %s21_s22   ;;  %s1104_s21 = sphi %s1155_s21, %s1585_s21   ;;  %s1100_s20 = sphi %s1153_s20, %s1596_s20   ;;  %s1096_s19 = sphi %s1151_s19, %s1583_s19   ;;  %s1092_s18 = sphi %s1149_s18, %s1595_s18   ;;  %s1088_s17 = sphi %s1147_s17, %s1594_s17   ;;  %s1084_s16 = sphi %s1145_s16, %s1593_s16   ;;  %s1080_s15 = sphi %s1143_s15, %s1592_s15   ;;  %s1076_s14 = sphi %s1141_s14, %s1591_s14   ;;  %s1072_s13 = sphi %s1139_s13, %s1590_s13   ;;  %s1068_s12 = sphi %s1137_s12, %s1589_s12   ;;  %s1064_s11 = sphi %s1135_s11, %s1588_s11   ;;  %s1060_s10 = sphi %s1133_s10, %s1587_s10   ;;  %s1056_s9 = sphi %s1131_s9, %s1586_s9  }
  0x10   : > { %1561 = sst [smem:[#allocation12_spill]] %s1104_s21  ;;  %s33_s24 = sadd.s32 1, %s1104_s21 }
  0x11   : > { %s40_s25 = sadd.s32 1, %s1088_s17  ;;  %p47_p0 = scmp.ne.s32.totalorder %s1088_s17, %s1084_s16 }
  0x12   : > { %p48_p1 = scmp.eq.s32.totalorder %s1108_s22, 0  ;;  %p53_p2 = scmp.ne.s32.totalorder %s1084_s16, %s1080_s15 }
  0x13   : > { %p1206_p3 = scmp.eq.s32.totalorder %s647_s23, 0  ;;  %p1210_p4 = scmp.eq.s32.totalorder %s647_s23, 3 }
  0x14   : > { %p49_p5 = por %p48_p1, %p47_p0  ;;  %p746_p7 = scmp.lt.s32.totalorder %s1108_s22, 4 }
  0x15   : > { %p1218_p6 = por %p1206_p3, %p53_p2  ;;  %s131_s29 = sand.u32 1, %s1088_s17  }
  0x16   : > { %s676_s30 = sshll.u32 %s1104_s21, 7  ;;  %s651_s3 = sshll.u32 %s131_s29, 7 }
  0x17   : > { %s1565_s0 = sld [smem:[#allocation17_spill]]  ;;  %s135_s8 = scalar_lea.vmem [#allocation2], %s651_s3 }
  0x18   : > { %s143_s15 = sshll.u32 %s135_s8, 4  ;;  %p736_p8 = pnand %p746_p7, %p49_p5  ;;  %s144_s15 = int_to_ptr.vmem [resolvable:$true] %s143_s15 }
  0x19   : > { %p657_p9 = scmp.ge.s32.totalorder %s1108_s22, 1  ;;  %p173_p10 = scmp.lt.s32.totalorder %s1108_s22, 5 }
  0x1a   : > { %s132_s23 = scalar_lea.sflag [#allocation3], %s131_s29  ;;  %s1551_s4 = smov 8  }
  0x1b   : > { %p1235_p11 = pnand %p657_p9, %p173_p10  ;;  %s648_s5 = sadd.s32 4294967294, %s1108_s22  }
  0x1c   : > { %s66_s8 = sadd.s32 1, %s1076_s14  ;;  %p73_p13 = scmp.ne.s32.totalorder %s1076_s14, %s1072_s13 }
  0x1d   : > { %s140_s6 = scalar_lea.hbm %s1565_s0, %s676_s30  ;;  %s1550_s30 = smov 128  }
  0x1e   : > { %s141_s7 = sshll.u32 %s140_s6, 4  ;;  %s30_s6 = sadd.s32 1, %s1100_s20  ;;  %s142_s7 = int_to_ptr.hbm [resolvable:$true] %s141_s7 }
  0x1f   : > { %738 = dma.hbm_to_vmem [thread:$0]  (!%p736_p8), %s142_s7, 2048, %s144_s15, %s132_s23, %s1550_s30, %s1550_s30, %s1551_s4  }
  0x20   : > { %p31_p12 = scmp.ge.s32.totalorder %s30_s6, 2  ;;  %p79_p0 = scmp.ne.s32.totalorder %s1072_s13, %s1068_s12 }
  0x21   : > { %s94_s29 = sadd.s32 1, %s1064_s11  ;;  %p1256_p2 = por %p73_p13, %p48_p1 }
  0x22   : > { %s1598_s6 = smov (%p31_p12, %s30_s6), 0  ;;  %s1600_s24 = smov (!%p31_p12, %s33_s24), %s1104_s21 }
  0x23   : > { %1567 = sst [smem:[#allocation13_spill]] %s1598_s6  ;;  %s63_s7 = ssub.s32 %s1100_s20, %s1598_s6 }
  0x24   : > { %p35_p5 = scmp.ge.s32.totalorder %s1600_s24, 2  ;;  %p64_p8 = scmp.eq.s32.totalorder %s63_s7, 0 }
  0x25   : > { %p1262_p9 = por %p79_p0, %p1206_p3  ;;  %p104_p10 = scmp.ne.s32.totalorder %s1064_s11, %s1060_s10 }
  0x26   : > { %s1602_s24 = smov (%p35_p5, %s1600_s24), 0  ;;  %p110_p13 = scmp.ne.s32.totalorder %s1060_s10, %s1056_s9 }
  0x27   : > { %1570 = sst [smem:[#allocation14_spill]] %s1602_s24  ;;  %s37_s30 = ssub.s32 %s1104_s21, %s1602_s24 }
  0x28   : > { %s1271_s23 = scalar_select %p64_p8, %s1076_s14, %s66_s8  }
  0x29   : > { %p1277_p1 = por %p1210_p4, %p104_p10  ;;  %p38_p12 = scmp.eq.s32.totalorder %s37_s30, 0 }
  0x2a   : > { %1571 = sst [smem:[#allocation15_spill]] %s1271_s23  ;;  %s91_s26 = sor.u32 %s63_s7, %s37_s30 }
  0x2b   : > { %s1572_s4 = scalar_select %p1277_p1, 1, 0 }
  0x2c   : > { %p92_p3 = scmp.eq.s32.totalorder %s91_s26, 0  ;;  %p111_p0 = scmp.eq.s32.totalorder %s648_s5, 3 }
  0x2d   : > { %1573 = sst [smem:[#allocation16_spill]] %s1572_s4  ;;  %s153_s8 = sand.u32 1, %s1076_s14  }
  0x2e   : > { %s1286_s0 = scalar_select %p38_p12, %s1088_s17, %s40_s25  }
  0x2f   : > { %s1289_s6 = scalar_select %p92_p3, %s1064_s11, %s94_s29  }
  0x30   : > { %s654_s23 = sshll.u32 %s153_s8, 7  ;;  %p1292_p5 = por %p111_p0, %p110_p13 }
  0x31   : > { %s677_s24 = sshll.u32 %s1100_s20, 7  ;;  %s157_s21 = scalar_lea.vmem [#allocation5], %s654_s23 }
  0x32   : > { %s165_s2 = sshll.u32 %s157_s21, 4  ;;  %s162_s30 = scalar_lea.hbm %s1548_s1, %s677_s24  ;;  %s166_s2 = int_to_ptr.vmem [resolvable:$true] %s165_s2 }
  0x33   : > { %s163_s7 = sshll.u32 %s162_s30, 4  ;;  %p739_p4 = pnand %p746_p7, %p1256_p2  ;;  %s164_s7 = int_to_ptr.hbm [resolvable:$true] %s163_s7 }
  0x34   : > { %s154_s25 = scalar_lea.sflag [#allocation6], %s153_s8  ;;  %s1575_s5 = smov 8  }
  0x35   : > { %s1576_s29 = smov 128   ;;  %177 = sbr.rel (%p1235_p11) target bundleno = 348 (0x15c), region = 28 }
  0x36   : > { %741 = dma.hbm_to_vmem [thread:$0]  (!%p739_p4), %s164_s7, 2048, %s166_s2, %s154_s25, %s1576_s29, %s1576_s29, %s1575_s5  }
  0x37   : > { %s179_s21 = sand.u32 (!%p1235_p11), 1, %s1084_s16  }
  0x38   : > { %s658_s23 = sshll.u32 (!%p1235_p11), %s179_s21, 7  ;;  %s180_s18 = scalar_lea.sflag (!%p1235_p11), [#allocation3], %s179_s21 }
  0x39   : > { %s1310_s24 = scalar_lea.vmem (!%p1235_p11), [#allocation2], %s658_s23 }
  0x3a   : > { %1043 = dma.done.wait (%p1218_p6), %s180_s18, 2048  }
  0x3b   : > { %1045 = vsyncadd (%p1218_p6), %s180_s18, 4294965248  ;;  %s189_s4 = sand.u32 1, %s1072_s13  }
  0x3c   : > { %s659_s15 = sshll.u32 %s189_s4, 7  ;;  %s190_s2 = scalar_lea.sflag [#allocation6], %s189_s4 }
  0x3d   : > { %s1317_s26 = scalar_lea.vmem [#allocation5], %s659_s15 }
  0x3e   : > { %1047 = dma.done.wait (%p1262_p9), %s190_s2, 2048  }
  0x3f   : > { %1049 = vsyncadd (%p1262_p9), %s190_s2, 4294965248  ;;  %s1577_s3 = sld [smem:[#allocation11_spill]]  ;;  %s217_s8 = sand.u32 1, %s1060_s10  }
  0x40   : > { %s1325_s30 = sshll.u32 %s1096_s19, 7  ;;  %s660_s28 = sshll.u32 %s217_s8, 7 }
  0x41   : > { %s225_s25 = sadd.s32 127, %s1325_s30  ;;  %s1339_s21 = scalar_lea.vmem [#allocation7], %s660_s28 }
  0x45   : > { %s1330_s7 = sshll.u32 %s1577_s3, 7 }
  0x46   : > { %s226_s5 = ssub.s32 %s1330_s7, %s225_s25  ;;  %s227_s29 = sadd.s32 127, %s1330_s7 }
  0x47   : > { %s228_s12 = ssub.s32 %s1325_s30, %s227_s29 }
  0x48   : > { %p229_p6 = scmp.gt.s32.totalorder %s226_s5, %s228_s12 }
  0x4a   : > { %s1604_s5 = smov (!%p229_p6, %s226_s5), %s228_s12 }
  0x4b   : > { %p663_p7 = scmp.le.s32.totalorder %s1604_s5, 2 }
  0x4c   : > { %v268_v0 = vld [vmem:[%s1317_s26 + $0x78] sm:$0xff] (%p663_p7)  ;;  %v267_v1 = vld [vmem:[%s1317_s26 + $0x70] sm:$0xff] (%p663_p7)  ;;  %v266_v2 = vld [vmem:[%s1317_s26 + $0x68] sm:$0xff] (%p663_p7)  ;;  %v350_v32 = vlaneseq (%p663_p7)  ;;  %v1376_v35 = vstv (%p663_p7), %s1325_s30 }
  0x4d   : > { %236 = sbr.rel (!%p663_p7) target bundleno = 306 (0x132), region = 40  ;;  %682 = vmatpush.xpose.msra.mxu2 (%p663_p7), %v268_v0  ;;  %683 = vmatpush.xpose.msra.mxu3 (%p663_p7), %v268_v0  ;;  %v265_v3 = vld [vmem:[%s1317_s26 + $0x60] sm:$0xff] (%p663_p7)  ;;  %v264_v4 = vld [vmem:[%s1317_s26 + $0x58] sm:$0xff] (%p663_p7)  ;;  %v263_v5 = vld [vmem:[%s1317_s26 + $0x50] sm:$0xff] (%p663_p7)  ;;  %v386_v36 = vstv (%p663_p7), %s1330_s7 }
  0x4e   : > { %269 = vmatpush.xpose.msra.mxu0 (%p663_p7), %v268_v0  ;;  %681 = vmatpush.xpose.msra.mxu1 (%p663_p7), %v268_v0  ;;  %v262_v6 = vld [vmem:[%s1317_s26 + $0x48] sm:$0xff] (%p663_p7)  ;;  %v261_v7 = vld [vmem:[%s1317_s26 + $0x40] sm:$0xff] (%p663_p7)  ;;  %v260_v8 = vld [vmem:[%s1317_s26 + $0x38] sm:$0xff] (%p663_p7)  ;;  %v1373_v33 = vshrl.u32 (%p663_p7), %v350_v32, 7  ;;  %v385_v34 = vand.u32 (%p663_p7), 127, %v350_v32 }
  0x4f   : > { %v259_v9 = vld [vmem:[%s1317_s26 + $0x30] sm:$0xff] (%p663_p7)  ;;  %v258_v10 = vld [vmem:[%s1317_s26 + $0x28] sm:$0xff] (%p663_p7)  ;;  %v257_v11 = vld [vmem:[%s1317_s26 + $0x20] sm:$0xff] (%p663_p7) }
  0x50   : > { %v256_v12 = vld [vmem:[%s1317_s26 + $0x18] sm:$0xff] (%p663_p7)  ;;  %v255_v13 = vld [vmem:[%s1317_s26 + $0x10] sm:$0xff] (%p663_p7)  ;;  %v254_v14 = vld [vmem:[%s1317_s26 + $0x8] sm:$0xff] (%p663_p7)  ;;  %v368_v37 = vadd.s32 (%p663_p7), %v1376_v35, %v1373_v33  ;;  %v1381_v38 = vadd.s32 (%p663_p7), %v386_v36, %v385_v34  ;;  %v355_v39 = vadd.s32 (%p663_p7), 32, %v1373_v33  ;;  %v359_v40 = vadd.s32 (%p663_p7), 64, %v1373_v33 }
  0x51   : > { %685 = vmatpush.xpose.msra.mxu2 (%p663_p7), %v267_v1  ;;  %686 = vmatpush.xpose.msra.mxu3 (%p663_p7), %v267_v1  ;;  %v253_v15 = vld [vmem:[%s1317_s26] sm:$0xff] (%p663_p7)  ;;  %v246_v20 = vld [vmem:[%s1310_s24 + $0x48] sm:$0xff] (%p663_p7)  ;;  %v247_v24 = vld [vmem:[%s1310_s24 + $0x50] sm:$0xff] (%p663_p7)  ;;  %v363_v41 = vadd.s32 (%p663_p7), 96, %v1373_v33  ;;  %v352_v45 = vadd.s32 (%p663_p7), 8, %v1373_v33  ;;  %v356_v46 = vadd.s32 (%p663_p7), 40, %v1373_v33 }
  0x52   : > { %270 = vmatpush.xpose.msra.mxu0 %v267_v1  ;;  %684 = vmatpush.xpose.msra.mxu1 %v267_v1  ;;  %v245_v16 = vld [vmem:[%s1310_s24 + $0x40] sm:$0xff]  ;;  %v250_v21 = vld [vmem:[%s1310_s24 + $0x68] sm:$0xff]  ;;  %v251_v25 = vld [vmem:[%s1310_s24 + $0x70] sm:$0xff]  ;;  %v388_v42 = vsub.s32 %v368_v37, %v1381_v38  ;;  %v372_v43 = vadd.s32 %v1376_v35, %v355_v39  ;;  %v376_v44 = vadd.s32 %v1376_v35, %v359_v40  ;;  %v360_v50 = vadd.s32 72, %v1373_v33 }
  0x53   : > { %v249_v17 = vld [vmem:[%s1310_s24 + $0x60] sm:$0xff]  ;;  %v238_v22 = vld [vmem:[%s1310_s24 + $0x8] sm:$0xff]  ;;  %v239_v26 = vld [vmem:[%s1310_s24 + $0x10] sm:$0xff]  ;;  %v380_v47 = vadd.s32 %v1376_v35, %v363_v41  ;;  %v369_v52 = vadd.s32 %v1376_v35, %v352_v45  ;;  %v373_v53 = vadd.s32 %v1376_v35, %v356_v46  ;;  %v364_v58 = vadd.s32 104, %v1373_v33 }
  0x54   : > { %v237_v18 = vld [vmem:[%s1310_s24] sm:$0xff]  ;;  %v242_v23 = vld [vmem:[%s1310_s24 + $0x28] sm:$0xff]  ;;  %v243_v27 = vld [vmem:[%s1310_s24 + $0x30] sm:$0xff]  ;;  %v405_v48 = vsub.s32 0, %v388_v42  ;;  %v392_v49 = vsub.s32 %v372_v43, %v1381_v38  ;;  %vm404_vm0 = vcmp.lt.s32.totalorder %v388_v42, 0  ;;  %v396_v51 = vsub.s32 %v376_v44, %v1381_v38 }
  0x55   : > { %688 = vmatpush.xpose.msra.mxu2 %v266_v2  ;;  %689 = vmatpush.xpose.msra.mxu3 %v266_v2  ;;  %v241_v19 = vld [vmem:[%s1310_s24 + $0x20] sm:$0xff]  ;;  %v248_v28 = vld [vmem:[%s1310_s24 + $0x58] sm:$0xff]  ;;  %v400_v54 = vsub.s32 %v380_v47, %v1381_v38  ;;  %v377_v57 = vadd.s32 %v1376_v35, %v360_v50  ;;  %v389_v62 = vsub.s32 %v369_v52, %v1381_v38  ;;  %v353_v0 = vadd.s32 16, %v1373_v33 }
  0x56   : > { %271 = vmatpush.xpose.msra.mxu0 %v266_v2  ;;  %687 = vmatpush.xpose.msra.mxu1 %v266_v2  ;;  %v252_v29 = vld [vmem:[%s1310_s24 + $0x78] sm:$0xff]  ;;  %v406_v55 = vsel %vm404_vm0, %v405_v48, %v388_v42  ;;  %v417_v56 = vsub.s32 0, %v392_v49  ;;  %vm416_vm1 = vcmp.lt.s32.totalorder %v392_v49, 0  ;;  %v429_v61 = vsub.s32 0, %v396_v51 }
  0x57   : > { %v240_v30 = vld [vmem:[%s1310_s24 + $0x18] sm:$0xff]  ;;  %v393_v63 = vsub.s32 %v373_v53, %v1381_v38  ;;  %vm428_vm2 = vcmp.lt.s32.totalorder %v396_v51, 0  ;;  %v357_v1 = vadd.s32 48, %v1373_v33  ;;  %v441_v2 = vsub.s32 0, %v400_v54 }
  0x58   : > { %v244_v31 = vld [vmem:[%s1310_s24 + $0x38] sm:$0xff]  ;;  %vm440_vm3 = vcmp.lt.s32.totalorder %v400_v54, 0  ;;  %vm452_vm4 = vcmp.le.s32.totalorder %v406_v55, 2  ;;  %vm407_vm5 = vcmp.lt.s32.totalorder %v389_v62, 0 }
  0x59   : > { %691 = vmatpush.xpose.msra.mxu2 %v265_v3  ;;  %692 = vmatpush.xpose.msra.mxu3 %v265_v3  ;;  %vm419_vm6 = vcmp.lt.s32.totalorder %v393_v63, 0 }
  0x5a   : > { %272 = vmatpush.xpose.msra.mxu0 %v265_v3  ;;  %690 = vmatpush.xpose.msra.mxu1 %v265_v3  ;;  %v418_v3 = vsel %vm416_vm1, %v417_v56, %v392_v49  ;;  %v362_v49 = vadd.s32 88, %v1373_v33  ;;  %v366_v56 = vadd.s32 120, %v1373_v33 }
  0x5b   : > { %vm456_vm7 = vcmp.le.s32.totalorder %v418_v3, 2 }
  0x5d   : > { %694 = vmatpush.xpose.msra.mxu2 %v264_v4  ;;  %695 = vmatpush.xpose.msra.mxu3 %v264_v4 }
  0x5e   : > { %273 = vmatpush.xpose.msra.mxu0 %v264_v4  ;;  %693 = vmatpush.xpose.msra.mxu1 %v264_v4  ;;  %v397_v4 = vsub.s32 %v377_v57, %v1381_v38 }
  0x60   : > { %vm431_vm8 = vcmp.lt.s32.totalorder %v397_v4, 0 }
  0x61   : > { %697 = vmatpush.xpose.msra.mxu2 %v263_v5  ;;  %698 = vmatpush.xpose.msra.mxu3 %v263_v5 }
  0x62   : > { %274 = vmatpush.xpose.msra.mxu0 %v263_v5  ;;  %696 = vmatpush.xpose.msra.mxu1 %v263_v5  ;;  %v381_v5 = vadd.s32 %v1376_v35, %v364_v58 }
  0x65   : > { %700 = vmatpush.xpose.msra.mxu2 %v262_v6  ;;  %701 = vmatpush.xpose.msra.mxu3 %v262_v6 }
  0x66   : > { %275 = vmatpush.xpose.msra.mxu0 %v262_v6  ;;  %699 = vmatpush.xpose.msra.mxu1 %v262_v6  ;;  %v430_v6 = vsel %vm428_vm2, %v429_v61, %v396_v51 }
  0x67   : > { %vm460_vm9 = vcmp.le.s32.totalorder %v430_v6, 2 }
  0x69   : > { %703 = vmatpush.xpose.msra.mxu2 %v261_v7  ;;  %704 = vmatpush.xpose.msra.mxu3 %v261_v7 }
  0x6a   : > { %276 = vmatpush.xpose.msra.mxu0 %v261_v7  ;;  %702 = vmatpush.xpose.msra.mxu1 %v261_v7  ;;  %v408_v7 = vsub.s32 0, %v389_v62 }
  0x6d   : > { %706 = vmatpush.xpose.msra.mxu2 %v260_v8  ;;  %707 = vmatpush.xpose.msra.mxu3 %v260_v8 }
  0x6e   : > { %277 = vmatpush.xpose.msra.mxu0 %v260_v8  ;;  %705 = vmatpush.xpose.msra.mxu1 %v260_v8  ;;  %v420_v8 = vsub.s32 0, %v393_v63 }
  0x71   : > { %709 = vmatpush.xpose.msra.mxu2 %v259_v9  ;;  %710 = vmatpush.xpose.msra.mxu3 %v259_v9 }
  0x72   : > { %278 = vmatpush.xpose.msra.mxu0 %v259_v9  ;;  %708 = vmatpush.xpose.msra.mxu1 %v259_v9 }
  0x75   : > { %712 = vmatpush.xpose.msra.mxu2 %v258_v10  ;;  %713 = vmatpush.xpose.msra.mxu3 %v258_v10 }
  0x76   : > { %279 = vmatpush.xpose.msra.mxu0 %v258_v10  ;;  %711 = vmatpush.xpose.msra.mxu1 %v258_v10 }
  0x79   : > { %715 = vmatpush.xpose.msra.mxu2 %v257_v11  ;;  %716 = vmatpush.xpose.msra.mxu3 %v257_v11 }
  0x7a   : > { %280 = vmatpush.xpose.msra.mxu0 %v257_v11  ;;  %714 = vmatpush.xpose.msra.mxu1 %v257_v11  ;;  %v370_v11 = vadd.s32 %v1376_v35, %v353_v0 }
  0x7d   : > { %718 = vmatpush.xpose.msra.mxu2 %v256_v12  ;;  %719 = vmatpush.xpose.msra.mxu3 %v256_v12 }
  0x7e   : > { %281 = vmatpush.xpose.msra.mxu0 %v256_v12  ;;  %717 = vmatpush.xpose.msra.mxu1 %v256_v12  ;;  %v374_v12 = vadd.s32 %v1376_v35, %v357_v1  ;;  %v383_v1 = vadd.s32 %v1376_v35, %v366_v56 }
  0x81   : > { %721 = vmatpush.xpose.msra.mxu2 %v255_v13  ;;  %722 = vmatpush.xpose.msra.mxu3 %v255_v13 }
  0x82   : > { %282 = vmatpush.xpose.msra.mxu0 %v255_v13  ;;  %720 = vmatpush.xpose.msra.mxu1 %v255_v13  ;;  %v442_v13 = vsel %vm440_vm3, %v441_v2, %v400_v54 }
  0x83   : > { %vm464_vm10 = vcmp.le.s32.totalorder %v442_v13, 2 }
  0x85   : > { %724 = vmatpush.xpose.msra.mxu2 %v254_v14  ;;  %725 = vmatpush.xpose.msra.mxu3 %v254_v14 }
  0x86   : > { %283 = vmatpush.xpose.msra.mxu0 %v254_v14  ;;  %723 = vmatpush.xpose.msra.mxu1 %v254_v14  ;;  %v361_v14 = vadd.s32 80, %v1373_v33 }
  0x89   : > { %727 = vmatpush.xpose.msra.mxu2 %v253_v15  ;;  %728 = vmatpush.xpose.msra.mxu3 %v253_v15 }
  0x8a   : > { %284 = vmatpush.xpose.msra.mxu0 %v253_v15  ;;  %726 = vmatpush.xpose.msra.mxu1 %v253_v15 }
  0x8c   : > { %309 = vmatmul.f32.vlgmr.msra.gmra.mxu2 %v245_v16  ;;  %321 = vmatmul.f32.vlgmr.msra.gmra.mxu3 %v249_v17  ;;  %v432_v16 = vsub.s32 0, %v397_v4  ;;  %v401_v17 = vsub.s32 %v381_v5, %v1381_v38 }
  0x8d   : > { %285 = vmatmul.f32.vlgmr.msra.gmra.mxu0 %v237_v18  ;;  %297 = vmatmul.f32.vlgmr.msra.gmra.mxu1 %v241_v19 }
  0x8e   : > { %vm443_vm11 = vcmp.lt.s32.totalorder %v401_v17, 0  ;;  %v433_v34 = vsel %vm431_vm8, %v432_v16, %v397_v4  ;;  %v403_v16 = vsub.s32 %v383_v1, %v1381_v38 }
  0x8f   : > { %vm461_vm0 = vcmp.le.s32.totalorder %v433_v34, 2 }
  0x94   : > { %312 = vmatmul.f32.gmra.mxu2 %v246_v20  ;;  %324 = vmatmul.f32.gmra.mxu3 %v250_v21  ;;  %v409_v21 = vsel %vm407_vm5, %v408_v7, %v389_v62 }
  0x95   : > { %288 = vmatmul.f32.gmra.mxu0 %v238_v22  ;;  %300 = vmatmul.f32.gmra.mxu1 %v242_v23  ;;  %v421_v23 = vsel %vm419_vm6, %v420_v8, %v393_v63  ;;  %vm453_vm12 = vcmp.le.s32.totalorder %v409_v21, 2 }
  0x96   : > { %vm457_vm13 = vcmp.le.s32.totalorder %v421_v23, 2 }
  0x9c   : > { %315 = vmatmul.f32.gmra.mxu2 %v247_v24  ;;  %327 = vmatmul.f32.gmra.mxu3 %v251_v25  ;;  %v365_v24 = vadd.s32 112, %v1373_v33 }
  0x9d   : > { %291 = vmatmul.f32.gmra.mxu0 %v239_v26  ;;  %303 = vmatmul.f32.gmra.mxu1 %v243_v27  ;;  %v390_v26 = vsub.s32 %v370_v11, %v1381_v38  ;;  %v394_v27 = vsub.s32 %v374_v12, %v1381_v38 }
  0x9e   : > { %v382_v36 = vadd.s32 %v1376_v35, %v365_v24 }
  0x9f   : > { %vm410_vm14 = vcmp.lt.s32.totalorder %v390_v26, 0  ;;  %v411_v42 = vsub.s32 0, %v390_v26  ;;  %v423_v43 = vsub.s32 0, %v394_v27  ;;  %vm422_vm15 = vcmp.lt.s32.totalorder %v394_v27, 0 }
  0xa0   : > { %v402_v55 = vsub.s32 %v382_v36, %v1381_v38 }
  0xa1   : > { %v412_v58 = vsel %vm410_vm14, %v411_v42, %v390_v26 }
  0xa2   : > { %v447_v0 = vsub.s32 0, %v402_v55  ;;  %vm454_vm3 = vcmp.le.s32.totalorder %v412_v58, 2  ;;  %vm446_vm5 = vcmp.lt.s32.totalorder %v402_v55, 0 }
  0xa4   : > { %318 = vmatmul.f32.gmra.mxu2 %v248_v28  ;;  %330 = vmatmul.f32.gmra.mxu3 %v252_v29  ;;  %v378_v28 = vadd.s32 %v1376_v35, %v361_v14  ;;  %v354_v29 = vadd.s32 24, %v1373_v33  ;;  %v448_v13 = vsel %vm446_vm5, %v447_v0, %v402_v55 }
  0xa5   : > { %294 = vmatmul.f32.gmra.mxu0 %v240_v30  ;;  %306 = vmatmul.f32.gmra.mxu1 %v244_v31  ;;  %v444_v30 = vsub.s32 0, %v401_v17  ;;  %v358_v31 = vadd.s32 56, %v1373_v33  ;;  %v379_v33 = vadd.s32 %v1376_v35, %v362_v49 }
  0xa6   : > { %v398_v45 = vsub.s32 %v378_v28, %v1381_v38  ;;  %v371_v46 = vadd.s32 %v1376_v35, %v354_v29 }
  0xa7   : > { %v375_v48 = vadd.s32 %v1376_v35, %v358_v31  ;;  %v445_v52 = vsel %vm443_vm11, %v444_v30, %v401_v17 }
  0xa8   : > { %v391_v61 = vsub.s32 %v371_v46, %v1381_v38  ;;  %vm465_vm1 = vcmp.le.s32.totalorder %v445_v52, 2  ;;  %vm434_vm2 = vcmp.lt.s32.totalorder %v398_v45, 0 }
  0xa9   : > { %v395_v62 = vsub.s32 %v375_v48, %v1381_v38 }
  0xaa   : > { %v414_v8 = vsub.s32 0, %v391_v61  ;;  %vm413_vm6 = vcmp.lt.s32.totalorder %v391_v61, 0 }
  0xab   : > { %v426_v35 = vsub.s32 0, %v395_v62 }
 0x10a   : > { %v286_v59 = vpop.f32.mrf.mxu0  ;;  %v298_v60 = vpop.f32.mrf.mxu1 }
 0x10b   : > { %866 = vtanh.f32 %v286_v59  ;;  %v424_v59 = vsel %vm422_vm15, %v423_v43, %v394_v27 }
 0x10c   : > { %868 = vtanh.f32 %v298_v60  ;;  %v435_v60 = vsub.s32 0, %v398_v45 }
 0x10e   : > { %v436_v7 = vsel %vm434_vm2, %v435_v60, %v398_v45 }
 0x10f   : > { %v310_v9 = vpop.f32.mrf.mxu2  ;;  %v322_v10 = vpop.f32.mrf.mxu3  ;;  %vm462_vm8 = vcmp.le.s32.totalorder %v436_v7, 2 }
 0x110   : > { %870 = vtanh.f32 %v310_v9 }
 0x111   : > { %v867_v15 = vpop.eup %866  ;;  %872 = vtanh.f32 %v322_v10  ;;  %v399_v10 = vsub.s32 %v379_v33, %v1381_v38 }
 0x112   : > { %v869_v18 = vpop.eup %868  ;;  %v468_v19 = vsel %vm452_vm4, %v867_v15, 0.0  ;;  %v289_v20 = vpop.f32.mrf.mxu0  ;;  %vm458_vm4 = vcmp.le.s32.totalorder %v424_v59, 2 }
 0x113   : > { %v301_v22 = vpop.f32.mrf.mxu1  ;;  %484 = vst [vmem:[%s1339_s21] sm:$0xff] %v468_v19  ;;  %v472_v25 = vsel %vm456_vm7, %v869_v18, 0.0  ;;  %874 = vtanh.f32 %v289_v20  ;;  %vm425_vm7 = vcmp.lt.s32.totalorder %v395_v62, 0  ;;  %v415_v18 = vsel %vm413_vm6, %v414_v8, %v391_v61 }
 0x114   : > { %488 = vst [vmem:[%s1339_s21 + $0x20] sm:$0xff] %v472_v25  ;;  %876 = vtanh.f32 %v301_v22  ;;  %v427_v19 = vsel %vm425_vm7, %v426_v35, %v395_v62  ;;  %v438_v20 = vsub.s32 0, %v399_v10  ;;  %v450_v22 = vsub.s32 0, %v403_v16 }
 0x115   : > { %vm455_vm11 = vcmp.le.s32.totalorder %v415_v18, 2 }
 0x116   : > { %v871_v32 = vpop.eup %870 }
 0x117   : > { %v873_v37 = vpop.eup %872  ;;  %v476_v39 = vsel %vm460_vm9, %v871_v32, 0.0  ;;  %v313_v40 = vpop.f32.mrf.mxu2  ;;  %vm466_vm9 = vcmp.le.s32.totalorder %v448_v13, 2 }
 0x118   : > { %v325_v41 = vpop.f32.mrf.mxu3  ;;  %492 = vst [vmem:[%s1339_s21 + $0x40] sm:$0xff] %v476_v39  ;;  %v480_v44 = vsel %vm464_vm10, %v873_v37, 0.0  ;;  %878 = vtanh.f32 %v313_v40  ;;  %vm437_vm10 = vcmp.lt.s32.totalorder %v399_v10, 0 }
 0x119   : > { %v875_v47 = vpop.eup %874  ;;  %496 = vst [vmem:[%s1339_s21 + $0x60] sm:$0xff] %v480_v44  ;;  %880 = vtanh.f32 %v325_v41  ;;  %v439_v28 = vsel %vm437_vm10, %v438_v20, %v399_v10 }
 0x11a   : > { %v877_v50 = vpop.eup %876  ;;  %v469_v51 = vsel %vm453_vm12, %v875_v47, 0.0  ;;  %v292_v53 = vpop.f32.mrf.mxu0  ;;  %vm449_vm12 = vcmp.lt.s32.totalorder %v403_v16, 0  ;;  %vm463_vm14 = vcmp.le.s32.totalorder %v439_v28, 2 }
 0x11b   : > { %v304_v54 = vpop.f32.mrf.mxu1  ;;  %485 = vst [vmem:[%s1339_s21 + $0x8] sm:$0xff] %v469_v51  ;;  %v473_v57 = vsel %vm457_vm13, %v877_v50, 0.0  ;;  %882 = vtanh.f32 %v292_v53  ;;  %vm459_vm13 = vcmp.le.s32.totalorder %v427_v19, 2  ;;  %v451_v31 = vsel %vm449_vm12, %v450_v22, %v403_v16 }
 0x11c   : > { %489 = vst [vmem:[%s1339_s21 + $0x28] sm:$0xff] %v473_v57  ;;  %884 = vtanh.f32 %v304_v54  ;;  %vm467_vm15 = vcmp.le.s32.totalorder %v451_v31, 2 }
 0x11e   : > { %v879_v63 = vpop.eup %878 }
 0x11f   : > { %v881_v2 = vpop.eup %880  ;;  %v477_v3 = vsel %vm461_vm0, %v879_v63, 0.0  ;;  %v316_v4 = vpop.f32.mrf.mxu2 }
 0x120   : > { %v328_v5 = vpop.f32.mrf.mxu3  ;;  %493 = vst [vmem:[%s1339_s21 + $0x48] sm:$0xff] %v477_v3  ;;  %v481_v6 = vsel %vm465_vm1, %v881_v2, 0.0  ;;  %886 = vtanh.f32 %v316_v4 }
 0x121   : > { %v883_v9 = vpop.eup %882  ;;  %497 = vst [vmem:[%s1339_s21 + $0x68] sm:$0xff] %v481_v6  ;;  %888 = vtanh.f32 %v328_v5 }
 0x122   : > { %v885_v11 = vpop.eup %884  ;;  %v470_v12 = vsel %vm454_vm3, %v883_v9, 0.0  ;;  %v295_v14 = vpop.f32.mrf.mxu0 }
 0x123   : > { %v307_v15 = vpop.f32.mrf.mxu1  ;;  %486 = vst [vmem:[%s1339_s21 + $0x10] sm:$0xff] %v470_v12  ;;  %v474_v17 = vsel %vm458_vm4, %v885_v11, 0.0  ;;  %890 = vtanh.f32 %v295_v14 }
 0x124   : > { %490 = vst [vmem:[%s1339_s21 + $0x30] sm:$0xff] %v474_v17  ;;  %892 = vtanh.f32 %v307_v15 }
 0x126   : > { %v887_v21 = vpop.eup %886 }
 0x127   : > { %v889_v23 = vpop.eup %888  ;;  %v478_v24 = vsel %vm462_vm8, %v887_v21, 0.0  ;;  %v319_v38 = vpop.f32.mrf.mxu2 }
 0x128   : > { %v331_v25 = vpop.f32.mrf.mxu3  ;;  %494 = vst [vmem:[%s1339_s21 + $0x50] sm:$0xff] %v478_v24  ;;  %v482_v26 = vsel %vm466_vm9, %v889_v23, 0.0  ;;  %894 = vtanh.f32 %v319_v38 }
 0x129   : > { %v891_v27 = vpop.eup %890  ;;  %498 = vst [vmem:[%s1339_s21 + $0x70] sm:$0xff] %v482_v26  ;;  %896 = vtanh.f32 %v331_v25 }
 0x12a   : > { %v893_v29 = vpop.eup %892  ;;  %v471_v30 = vsel %vm455_vm11, %v891_v27, 0.0 }
 0x12b   : > { %487 = vst [vmem:[%s1339_s21 + $0x18] sm:$0xff] %v471_v30  ;;  %v475_v32 = vsel %vm459_vm13, %v893_v29, 0.0 }
 0x12c   : > { %491 = vst [vmem:[%s1339_s21 + $0x38] sm:$0xff] %v475_v32 }
 0x12e   : > { %v895_v34 = vpop.eup %894 }
 0x12f   : > { %v897_v36 = vpop.eup %896  ;;  %v479_v37 = vsel %vm463_vm14, %v895_v34, 0.0 }
 0x130   : > { %495 = vst [vmem:[%s1339_s21 + $0x58] sm:$0xff] %v479_v37  ;;  %v483_v39 = vsel %vm467_vm15, %v897_v36, 0.0 }
 0x131   : > { %499 = vst [vmem:[%s1339_s21 + $0x78] sm:$0xff] %v483_v39 }
 0x132 PF: > { %p667_p11 = scmp.gt.s32.totalorder %s1604_s5, 2 }
 0x133   : > { %v1112_v40 = vmov (%p667_p11), 0.0  }
 0x134   : > { %503 = sbr.rel (!%p667_p11) target bundleno = 324 (0x144), region = 44  ;;  %504 = vst [vmem:[%s1339_s21] sm:$0xff] (%p667_p11), %v1112_v40 }
 0x135   : > { %505 = vst [vmem:[%s1339_s21 + $0x8] sm:$0xff] (%p667_p11), %v1112_v40 }
 0x136   : > { %506 = vst [vmem:[%s1339_s21 + $0x10] sm:$0xff] (%p667_p11), %v1112_v40 }
 0x137   : > { %507 = vst [vmem:[%s1339_s21 + $0x18] sm:$0xff] (%p667_p11), %v1112_v40 }
 0x138   : > { %508 = vst [vmem:[%s1339_s21 + $0x20] sm:$0xff] (%p667_p11), %v1112_v40 }
 0x139   : > { %509 = vst [vmem:[%s1339_s21 + $0x28] sm:$0xff] %v1112_v40 }
 0x13a   : > { %510 = vst [vmem:[%s1339_s21 + $0x30] sm:$0xff] %v1112_v40 }
 0x13b   : > { %511 = vst [vmem:[%s1339_s21 + $0x38] sm:$0xff] %v1112_v40 }
 0x13c   : > { %512 = vst [vmem:[%s1339_s21 + $0x40] sm:$0xff] %v1112_v40 }
 0x13d   : > { %513 = vst [vmem:[%s1339_s21 + $0x48] sm:$0xff] %v1112_v40 }
 0x13e   : > { %514 = vst [vmem:[%s1339_s21 + $0x50] sm:$0xff] %v1112_v40 }
 0x13f   : > { %515 = vst [vmem:[%s1339_s21 + $0x58] sm:$0xff] %v1112_v40 }
 0x140   : > { %516 = vst [vmem:[%s1339_s21 + $0x60] sm:$0xff] %v1112_v40 }
 0x141   : > { %517 = vst [vmem:[%s1339_s21 + $0x68] sm:$0xff] %v1112_v40 }
 0x142   : > { %518 = vst [vmem:[%s1339_s21 + $0x70] sm:$0xff] %v1112_v40 }
 0x143   : > { %519 = vst [vmem:[%s1339_s21 + $0x78] sm:$0xff] %v1112_v40 }
 0x144 PF: > { %s1578_s23 = sld [smem:[#allocation11_spill]]  ;;  %s680_s24 = sshll.u32 %s1096_s19, 5 }
 0x145   : > { %s535_s15 = sshll.u32 %s1339_s21, 4  ;;  %s1580_s30 = sld [smem:[#allocation18_spill]]  ;;  %s536_s15 = int_to_ptr.vmem [resolvable:$true] %s535_s15 }
 0x146   : > { %s521_s25 = scalar_lea.sflag [#allocation4], %s217_s8 }
 0x14a   : > { %s532_s4 = sadd.s32 %s1578_s23, %s680_s24 }
 0x14b   : > { %s673_s2 = sshll.u32 %s532_s4, 3  ;;  %s978_s21 = scalar_lea.hbm %s1580_s30, 512 }
 0x14c   : > { %s534_s28 = scalar_lea.hbm %s1580_s30, %s673_s2 }
 0x14d   : > { %s537_s7 = sshll.u32 %s534_s28, 4  ;;  %s538_s7 = int_to_ptr.hbm [resolvable:$true] %s537_s7 }
 0x14e   : > { %s972_s5 = sshra.s32 %s538_s7, 4  ;;  %s973_s5 = int_to_ptr.hbm [resolvable:$true] %s972_s5 }
 0x14f   : > { %s974_s29 = scalar_lea.hbm %s973_s5, 128  ;;  %p979_p10 = scmp.lt.s32.totalorder %s973_s5, %s1580_s30 }
 0x150   : > { %p975_p2 = scmp.ne.s32.totalorder %s973_s5, %s974_s29  ;;  %p980_p12 = scmp.lt.s32.totalorder %s978_s21, %s974_s29 }
 0x152   : > { %p976_p8 = pnand %p975_p2, %p1277_p1  ;;  %p981_p3 = por %p980_p12, %p979_p10 }
 0x154   : > { %p977_p9 = pneg %p976_p8 }
 0x156   : > { %p982_p13 = pnand %p981_p3, %p977_p9 }
 0x158   : > { %985 = shalt.err (!%p982_p13)
}
 0x159   : > { %s1113_s8 = smov 128   ;;  %s1114_s4 = smov 256  }
 0x15a   : > { %s1115_s2 = smov 8  }
 0x15b   : > { %733 = dma.vmem_to_hbm [thread:$0]  (%p1277_p1), %s536_s15, 2048, %s538_s7, %s521_s25, %s1113_s8, %s1114_s4, %s1115_s2  }
 0x15c PF: > { %p747_p0 = scmp.ge.s32.totalorder %s1108_s22, 2  ;;  %s552_s26 = sand.u32 1, %s1056_s9  }
 0x15d   : > { %s553_s3 = scalar_lea.sflag [#allocation4], %s552_s26 }
 0x15e   : > { %p743_p4 = pnand %p747_p0, %p1292_p5 }
 0x160   : > { %p744_p6 = pneg %p743_p4 }
 0x162   : > { %1051 = dma.done.wait (%p744_p6), %s553_s3, 2048  }
 0x163   : > { %1053 = vsyncadd (%p744_p6), %s553_s3, 4294965248  ;;  %s21_s22 = sadd.s32 1, %s1108_s22   ;;  %s1582_s18 = sld [smem:[#allocation15_spill]] }
 0x164   : > { %p1500_p7 = scmp.ge.s32.totalorder %s21_s22, 6   ;;  %s1583_s19 = sld [smem:[#allocation12_spill]] }
 0x165   : > { %s1584_s27 = sld [smem:[#allocation13_spill]]  ;;  %s1586_s9 = smov %s1060_s10 }
 0x166   : > { %s1585_s21 = sld [smem:[#allocation14_spill]]  ;;  %s1587_s10 = smov %s1064_s11 }
 0x167   : > { %s1588_s11 = smov %s1289_s6  ;;  %s1589_s12 = smov %s1072_s13 }
 0x168   : > { %s1590_s13 = smov %s1076_s14  ;;  %s1592_s15 = smov %s1084_s16 }
 0x169   : > { %s1591_s14 = smov %s1582_s18  ;;  %s1593_s16 = smov %s1088_s17 }
 0x16a   : > { %s1594_s17 = smov %s1286_s0  ;;  %s1595_s18 = smov %s1100_s20 }
 0x16b   : > { %s1596_s20 = smov %s1584_s27  ;;  %20 = sbr.rel (!%p1500_p7) target bundleno = 15 (0xf), region = 94 }
 0x170   :  { %559 = vsyncpa [#allocation3], 1 }
 0x171   :  { %561 = vsyncpa [#allocation3 + $0x1], 1 }
 0x172   :  { %562 = vsyncpa [#allocation6], 1 }
 0x173   :  { %564 = vsyncpa [#allocation6 + $0x1], 1 }
 0x174   :  { %565 = vsyncpa [#allocation4], 1 }
 0x175   :  { %567 = vsyncpa [#allocation4 + $0x1], 1 }

</bundles_post_ra>
